<compile_context>
chip_gen: v7x
topology: tpu7x:2x2x1
jax: 0.10.0
libtpu: 0.0.40
codegen_flags: <defaults>
</compile_context>

<pallas_src>
import jax
import jax.numpy as jnp
from jax.experimental import pallas as pl
from jax.experimental.pallas import tpu as pltpu


def _single_variance_kernel(var_ref, o_ref):
    # var_ref: (1, 1) f32 scalar parameter in SMEM (resident across all steps)
    # o_ref:   (block_rows, 128) f32 lane-dense output tile in VMEM
    s = jnp.exp(var_ref[0, 0] * 10.0)                           # one EUP op per step
    o_ref[...] = jnp.full(o_ref.shape, s, dtype=o_ref.dtype)    # full-width broadcast store


def single_variance_forward(x, variance, *, tile_rows=2048):
    """Pallas equivalent of SingleVarianceNetwork.forward: (N, 1) filled with exp(var*10)."""
    n = x.shape[0]

    # Lane-dense layout: n scalars packed into rows of 128 lanes.
    rows = pl.cdiv(n, 128)
    # Block rows: multiple of 8 (sublane), capped at tile_rows; shrink for tiny N.
    block_rows = min(tile_rows, ((rows + 7) // 8) * 8)
    block_rows = max(block_rows, 8)
    num_blocks = pl.cdiv(rows, block_rows)
    rows_padded = num_blocks * block_rows

    var2d = jnp.asarray(variance, dtype=jnp.float32).reshape(1, 1)

    slab = pl.pallas_call(
        _single_variance_kernel,
        out_shape=jax.ShapeDtypeStruct((rows_padded, 128), jnp.float32),
        grid=(num_blocks,),
        in_specs=[
            pl.BlockSpec(memory_space=pltpu.SMEM),   # variance scalar, whole array in SMEM
        ],
        out_specs=pl.BlockSpec((block_rows, 128), lambda i: (i, 0)),
        compiler_params=pltpu.CompilerParams(
            dimension_semantics=("parallel",),
        ),
    )(var2d)

    # Unpack lane-dense slab to the exact (N, 1) result; padded tail rows dropped.
    # (reshape is metadata-only; the slice is an elided identity when n % 128 == 0)
    return slab.reshape(-1, 1)[:n]


if __name__ == "__main__":
    key = jax.random.PRNGKey(0)

    # Deterministic parameter init (matches nn.Parameter(torch.tensor(init_val))).
    init_val = 0.3
    variance = jnp.float32(init_val)

    # Small example input: batch of 8 query points with 3 coords (only len(x) is used).
    x = jax.random.normal(key, (8, 3), dtype=jnp.float32)

    out = single_variance_forward(x, variance)
    out = jax.block_until_ready(out)

    ref = jnp.ones((x.shape[0], 1), jnp.float32) * jnp.exp(variance * 10.0)
    assert out.shape == (8, 1)
    assert jnp.allclose(out, ref, rtol=1e-6, atol=1e-6)

    # Second check with a length that is not a multiple of the lane width,
    # exercising the padded-tail / slice path.
    x2 = jax.random.normal(key, (300, 3), dtype=jnp.float32)
    out2 = jax.block_until_ready(single_variance_forward(x2, variance))
    ref2 = jnp.ones((300, 1), jnp.float32) * jnp.exp(variance * 10.0)
    assert out2.shape == (300, 1)
    assert jnp.allclose(out2, ref2, rtol=1e-6, atol=1e-6)

    print("KERNEL_OK")
</pallas_src>

<mosaic_0001>
module attributes {stable_mosaic.version = 11 : i64} {
  func.func @_single_variance_kernel(%arg0: i32, %arg1: memref<1x1xf32, #tpu.memory_space<smem>>, %arg2: memref<8x128xf32, #tpu.memory_space<vmem>>) attributes {dimension_semantics = [#tpu.dimension_semantics<parallel>], iteration_bounds = array<i64: 1>, scalar_prefetch = 0 : i64, scratch_operands = 0 : i64, tpu.core_type = #tpu.core_type<tc>, window_params = [{transform_indices = @transform_0, window_bounds = array<i64: 1, 1>}, {transform_indices = @transform_1, window_bounds = array<i64: 8, 128>}]} {
    %c0 = arith.constant 0 : index
    %c0_0 = arith.constant 0 : index
    %0 = memref.load %arg1[%c0, %c0_0] : memref<1x1xf32, #tpu.memory_space<smem>>
    %cst = arith.constant 1.000000e+01 : f32
    %1 = arith.mulf %0, %cst : f32
    %2 = math.exp %1 : f32
    %3 = vector.broadcast %2 : f32 to vector<8x128xf32>
    %c0_1 = arith.constant 0 : index
    %c0_2 = arith.constant 0 : index
    %4 = vector.load %arg2[%c0_1, %c0_2] : memref<8x128xf32, #tpu.memory_space<vmem>>, vector<8x128xf32>
    tpu.vector_store %arg2[%c0_1, %c0_2], %3 {strides = array<i32>} : memref<8x128xf32, #tpu.memory_space<vmem>>, vector<8x128xf32>,
    return
  }
  func.func @transform_0(%arg0: i32) -> (i32, i32) {
    %c0_i32 = arith.constant 0 : i32
    %c0_i32_0 = arith.constant 0 : i32
    %c0_i32_1 = arith.constant 0 : i32
    return %c0_i32, %c0_i32_0 : i32, i32
  }
  func.func @transform_1(%arg0: i32) -> (i32, i32) {
    %c0_i32 = arith.constant 0 : i32
    %c0_i32_0 = arith.constant 0 : i32
    return %arg0, %c0_i32 : i32, i32
  }
}

</mosaic_0001>

<bundles_post_ra>
// kernel: tpu_custom_call.1
= control target key start
LH: loop header
LB: loop body
LE: loop exit
PB: predicated region body
PF: predicated region fallthrough
CT: control target
= control target key end

     0   :  { %s87_s0 = inlined_call_operand.<no memory space> [shape: f32[1,1], index: 0, kind: input, shape index: {}]   ;;  %s88_s1 = inlined_call_operand.hbm [shape: f32[8,128], index: 1, kind: output, shape index: {}]  }
   0x1   :  { %s11_s8 = smul.f32 10.0, %s87_s0 }
   0x2   :  { %7 = vsyncpa [#allocation4], 0  ;;  %s61_s9 = smov [#allocation3]  }
   0x3   :  { %v12_v0 = vstv %s11_s8  ;;  %s24_s10 = sshll.u32 %s61_s9, 4  ;;  %s25_s10 = int_to_ptr.vmem [resolvable:$true] %s24_s10 }
   0x4   :  { %v13_v1 = vmul.f32 1.442695, %v12_v0  ;;  %s37_s12 = scalar_lea.vmem %s25_s10, 128  ;;  %p42_p1 = scmp.lt.s32.totalorder %s25_s10, %s25_s10 }
   0x5   :  { %p38_p0 = scmp.ne.s32.totalorder %s25_s10, %s37_s12  ;;  %p43_p2 = scmp.lt.s32.totalorder %s37_s12, %s37_s12 }
   0x6   :  { %35 = vpow2.f32 %v13_v1 }
   0x7   :  { %p44_p3 = por %p43_p2, %p42_p1 }
   0x9   :  { %p45_p4 = pnand %p44_p3, %p38_p0 }
  0x10   :  { %v36_v2 = vpop.eup %35 }
  0x11   :  { %32 = vpush %v36_v2 }
  0x42   :  { %s33_s11 = spop %32 }
  0x43   :  { %v16_v3 = vstv %s33_s11 }
  0x44   :  { %17 = vst [vmem:[#allocation3] sm:$0xff] %v16_v3 }
  0x45   :  { %48 = shalt.err (!%p45_p4)
}
  0x46   :  { %s49_s14 = scalar_lea.hbm %s88_s1, 128 }
  0x47   :  { %p50_p5 = scmp.ne.s32.totalorder %s88_s1, %s49_s14  ;;  %p53_p6 = scmp.lt.u32.totalorder %s49_s14, %s88_s1 }
  0x49   :  { %p55_p7 = pnand %p53_p6, %p50_p5 }
  0x4b   :  { %58 = shalt.err (!%p55_p7)
}
  0x4c   :  { %27 = dma.vmem_to_hbm [thread:$0]  %s25_s10, 128, %s88_s1, [#allocation4]  }
  0x4d   :  { %59 = dma.done.wait [#allocation4], 128  }
  0x4e   :  { %60 = vsyncadd [#allocation4], 4294967168 }
  0x4f   :  { %31 = vsyncpa [#allocation4], 1 }

</bundles_post_ra>
